<compile_context>
chip_gen: v5e
topology: v5e:2x2
jax: 0.10.0
libtpu: 0.0.40
codegen_flags: <defaults>
</compile_context>

<pallas_src>
import functools
import math

import jax
import jax.numpy as jnp
from jax.experimental import pallas as pl
from jax.experimental.pallas import tpu as pltpu

LANE = 128      # vreg lane width
SUBLANE = 8     # vreg sublane count


def _round_up(x, m):
    return ((x + m - 1) // m) * m


# ----------------------------------------------------------------------------
# Fused kernel: whole MLP stack in one kernel body, layer loop unrolled in
# Python.  All weights/biases are resident in VMEM (~400 KiB bf16 for the
# example config).
#   x_ref : (bm, d0_pad)            f32 or bf16
#   refs  : [w0, b0, w1, b1, ..., o_ref]
#     w_i : (din_pad_i, dout_pad_i) bf16   (pre-transposed, zero-padded)
#     b_i : (1, dout_pad_i)         f32    (zero-padded)
#   o_ref : (bm, dlast_pad)         f32
# Zero-padded weight rows/cols + zero-padded biases keep padded lanes exactly
# zero through every ReLU, so there is no leakage between layers; the final
# sigmoid maps padded lanes to 0.5 but they are sliced off in the wrapper.
# ----------------------------------------------------------------------------
def _fused_mlp_kernel(x_ref, *refs, acts):
    o_ref = refs[-1]
    h = x_ref[...]
    for i, act in enumerate(acts):
        w = refs[2 * i][...]                         # bf16 weights (in, out)
        b = refs[2 * i + 1][...]                     # f32 bias (1, out)
        # bf16 MXU matmul with f32 accumulate; epilogue math stays f32.
        y = jnp.dot(h.astype(jnp.bfloat16), w, preferred_element_type=jnp.float32)
        y = y + b
        if act == "relu":
            y = jnp.maximum(y, 0.0)
        elif act == "sigmoid":
            y = jax.nn.sigmoid(y)                    # exp via EUP (free slot)
        h = y
    o_ref[...] = h.astype(o_ref.dtype)


def _choose_bm(B_pad):
    """Pick the batch tile: big tiles for HBM-roofline efficiency, but keep
    >=2 grid steps whenever possible so v7x's two TensorCores both work."""
    if B_pad <= 256:
        return B_pad                                   # single tile
    if B_pad <= 1024:
        return _round_up(pl.cdiv(B_pad, 2), SUBLANE)   # exactly 2 tiles
    return 512                                         # sweep point (256/512/1024)


def _fused_forward_call(x_in, packed, acts, bm):
    B_pad, d0_pad = x_in.shape
    out_pad = packed[-1][0].shape[1]
    grid = (B_pad // bm,)

    in_specs = [pl.BlockSpec((bm, d0_pad), lambda i: (i, 0))]
    flat_args = [x_in]

    # Cost / VMEM bookkeeping (all Python ints — shapes are static under jit).
    x_itemsize = jnp.dtype(x_in.dtype).itemsize
    flops = 0
    transcendentals = B_pad * out_pad                       # sigmoid exp
    bytes_accessed = B_pad * d0_pad * x_itemsize + B_pad * out_pad * 4
    vmem = 2 * bm * d0_pad * x_itemsize + 2 * bm * out_pad * 4   # x/out dbl-buf

    for w, b in packed:
        din_pad, dout_pad = w.shape
        in_specs.append(pl.BlockSpec((din_pad, dout_pad), lambda i: (0, 0)))
        in_specs.append(pl.BlockSpec((1, dout_pad), lambda i: (0, 0)))
        flat_args += [w, b]
        flops += 2 * B_pad * din_pad * dout_pad
        bytes_accessed += din_pad * dout_pad * 2 + dout_pad * 4
        vmem += 2 * (din_pad * dout_pad * 2 + SUBLANE * dout_pad * 4)

    # Generous VMEM limit, capped at 32 MiB (safe on v5e/v6e/v7x).
    vmem_limit = min(32 << 20, max(16 << 20, 2 * vmem))

    kernel = functools.partial(_fused_mlp_kernel, acts=tuple(acts))
    return pl.pallas_call(
        kernel,
        out_shape=jax.ShapeDtypeStruct((B_pad, out_pad), jnp.float32),
        grid=grid,
        in_specs=in_specs,
        out_specs=pl.BlockSpec((bm, out_pad), lambda i: (i, 0)),
        compiler_params=pltpu.CompilerParams(
            dimension_semantics=("parallel",),   # batch tiles shard across TCs
            vmem_limit_bytes=int(vmem_limit),
        ),
        cost_estimate=pl.CostEstimate(
            flops=int(flops),
            transcendentals=int(transcendentals),
            bytes_accessed=int(bytes_accessed),
        ),
    )(*flat_args)


def make_forward(acts, input_size):
    acts = tuple(acts)

    @jax.jit
    def forward(x, packed):
        B, D = x.shape
        d0_pad = packed[0][0].shape[0]
        B_pad = _round_up(max(B, SUBLANE), SUBLANE)
        bm = _choose_bm(B_pad)
        B_pad = _round_up(B_pad, bm)
        if B_pad == B and D == d0_pad:
            # Aligned fast path: no staging copy at all; the kernel DMAs x
            # straight from HBM (pass bf16 x to also halve the input DMA).
            x_in = x
        else:
            # Padding needed: fold the bf16 cast into the single pad copy so
            # the staging buffer + kernel input DMA are half the bytes of f32.
            x_in = jnp.zeros((B_pad, d0_pad), jnp.bfloat16).at[:B, :D].set(
                x.astype(jnp.bfloat16))
        out = _fused_forward_call(x_in, packed, acts, bm)
        return out[:B, :input_size]

    return forward


# ----------------------------------------------------------------------------
# Parameter construction mirroring DenseAutoencoder.__init__ (PyTorch layout),
# plus one-time packing for the kernel.
# ----------------------------------------------------------------------------
def build_params(key, input_size, min_size, shrink_factor):
    def init_linear(k, din, dout):
        # Mimics PyTorch's default U(-1/sqrt(din), 1/sqrt(din)).
        kw, kb = jax.random.split(k)
        bound = 1.0 / math.sqrt(din)
        W = jax.random.uniform(kw, (dout, din), jnp.float32, -bound, bound)
        b = jax.random.uniform(kb, (dout,), jnp.float32, -bound, bound)
        return W, b

    layers, acts = [], []
    current = input_size
    while current > min_size:                       # encoder
        out = max(min_size, current // shrink_factor)
        key, sub = jax.random.split(key)
        layers.append(init_linear(sub, current, out))
        acts.append("relu")
        current = out
    while current < input_size:                     # decoder
        out = min(input_size, current * shrink_factor)
        key, sub = jax.random.split(key)
        layers.append(init_linear(sub, current, out))
        acts.append("relu")
        current = out
    key, sub = jax.random.split(key)
    layers.append(init_linear(sub, current, input_size))   # out_layer
    acts.append("sigmoid")
    return layers, acts


def pack_params(layers):
    """One-time prep: transpose to (in, out), zero-pad to 128 lanes, bf16 weights."""
    packed = []
    for W, b in layers:
        dout, din = W.shape
        din_pad = _round_up(max(din, LANE), LANE)
        dout_pad = _round_up(max(dout, LANE), LANE)
        Wp = jnp.zeros((din_pad, dout_pad), jnp.float32).at[:din, :dout].set(W.T)
        bp = jnp.zeros((1, dout_pad), jnp.float32).at[0, :dout].set(b)
        packed.append((Wp.astype(jnp.bfloat16), bp))
    return packed


# Pure-JAX f32 reference matching the PyTorch forward.
def _ref_forward(x, layers, acts):
    for (W, b), act in zip(layers, acts):
        y = x @ W.T + b
        x = jnp.maximum(y, 0.0) if act == "relu" else jax.nn.sigmoid(y)
    return x


if __name__ == "__main__":
    input_size = 256
    min_size = 32
    shrink_factor = 2

    key = jax.random.PRNGKey(0)
    kparams, kx1, kx2 = jax.random.split(key, 3)
    layers, acts = build_params(kparams, input_size, min_size, shrink_factor)
    packed = pack_params(layers)
    forward = make_forward(acts, input_size)

    # Small aligned batch: exercises the zero-copy (no pad) fast path.
    x_small = jax.random.uniform(kx1, (8, input_size), jnp.float32)
    out_small = jax.block_until_ready(forward(x_small, packed))
    ref_small = _ref_forward(x_small, layers, acts)
    assert out_small.shape == (8, input_size)
    # bf16 matmul inputs (f32 accumulate) -> relaxed tolerance vs f32 reference.
    assert jnp.max(jnp.abs(out_small - ref_small)) < 2e-2

    # Ragged larger batch: exercises the bf16-folded pad + 2-tile parallel grid.
    x_big = jax.random.uniform(kx2, (600, input_size), jnp.float32)
    out_big = jax.block_until_ready(forward(x_big, packed))
    ref_big = _ref_forward(x_big, layers, acts)
    assert out_big.shape == (600, input_size)
    assert jnp.max(jnp.abs(out_big - ref_big)) < 2e-2

    print("KERNEL_OK")
</pallas_src>

<mosaic_0001>
module attributes {stable_mosaic.version = 11 : i64} {
  func.func @_fused_mlp_kernel(%arg0: i32, %arg1: memref<8x256xf32, #tpu.memory_space<vmem>>, %arg2: memref<256x128xbf16, #tpu.memory_space<vmem>>, %arg3: memref<1x128xf32, #tpu.memory_space<vmem>>, %arg4: memref<128x128xbf16, #tpu.memory_space<vmem>>, %arg5: memref<1x128xf32, #tpu.memory_space<vmem>>, %arg6: memref<128x128xbf16, #tpu.memory_space<vmem>>, %arg7: memref<1x128xf32, #tpu.memory_space<vmem>>, %arg8: memref<128x128xbf16, #tpu.memory_space<vmem>>, %arg9: memref<1x128xf32, #tpu.memory_space<vmem>>, %arg10: memref<128x128xbf16, #tpu.memory_space<vmem>>, %arg11: memref<1x128xf32, #tpu.memory_space<vmem>>, %arg12: memref<128x256xbf16, #tpu.memory_space<vmem>>, %arg13: memref<1x256xf32, #tpu.memory_space<vmem>>, %arg14: memref<256x256xbf16, #tpu.memory_space<vmem>>, %arg15: memref<1x256xf32, #tpu.memory_space<vmem>>, %arg16: memref<8x256xf32, #tpu.memory_space<vmem>>) attributes {dimension_semantics = [#tpu.dimension_semantics<parallel>], iteration_bounds = array<i64: 1>, scalar_prefetch = 0 : i64, scratch_operands = 0 : i64, tpu.core_type = #tpu.core_type<tc>, window_params = [{transform_indices = @transform_0, window_bounds = array<i64: 8, 256>}, {pipeline_mode = #tpu.pipeline_mode<synchronous>, transform_indices = @transform_1, window_bounds = array<i64: 256, 128>}, {pipeline_mode = #tpu.pipeline_mode<synchronous>, transform_indices = @transform_2, window_bounds = array<i64: 1, 128>}, {pipeline_mode = #tpu.pipeline_mode<synchronous>, transform_indices = @transform_3, window_bounds = array<i64: 128, 128>}, {pipeline_mode = #tpu.pipeline_mode<synchronous>, transform_indices = @transform_4, window_bounds = array<i64: 1, 128>}, {pipeline_mode = #tpu.pipeline_mode<synchronous>, transform_indices = @transform_5, window_bounds = array<i64: 128, 128>}, {pipeline_mode = #tpu.pipeline_mode<synchronous>, transform_indices = @transform_6, window_bounds = array<i64: 1, 128>}, {pipeline_mode = #tpu.pipeline_mode<synchronous>, transform_indices = @transform_7, window_bounds = array<i64: 128, 128>}, {pipeline_mode = #tpu.pipeline_mode<synchronous>, transform_indices = @transform_8, window_bounds = array<i64: 1, 128>}, {pipeline_mode = #tpu.pipeline_mode<synchronous>, transform_indices = @transform_9, window_bounds = array<i64: 128, 128>}, {pipeline_mode = #tpu.pipeline_mode<synchronous>, transform_indices = @transform_10, window_bounds = array<i64: 1, 128>}, {pipeline_mode = #tpu.pipeline_mode<synchronous>, transform_indices = @transform_11, window_bounds = array<i64: 128, 256>}, {pipeline_mode = #tpu.pipeline_mode<synchronous>, transform_indices = @transform_12, window_bounds = array<i64: 1, 256>}, {pipeline_mode = #tpu.pipeline_mode<synchronous>, transform_indices = @transform_13, window_bounds = array<i64: 256, 256>}, {pipeline_mode = #tpu.pipeline_mode<synchronous>, transform_indices = @transform_14, window_bounds = array<i64: 1, 256>}, {transform_indices = @transform_15, window_bounds = array<i64: 8, 256>}]} {
    %c0 = arith.constant 0 : index
    %c0_0 = arith.constant 0 : index
    %0 = vector.load %arg1[%c0, %c0_0] : memref<8x256xf32, #tpu.memory_space<vmem>>, vector<8x256xf32>
    %c0_1 = arith.constant 0 : index
    %c0_2 = arith.constant 0 : index
    %1 = vector.load %arg2[%c0_1, %c0_2] : memref<256x128xbf16, #tpu.memory_space<vmem>>, vector<256x128xbf16>
    %c0_3 = arith.constant 0 : index
    %c0_4 = arith.constant 0 : index
    %2 = vector.load %arg3[%c0_3, %c0_4] : memref<1x128xf32, #tpu.memory_space<vmem>>, vector<1x128xf32>
    %3 = arith.truncf %0 : vector<8x256xf32> to vector<8x256xbf16>
    %cst = arith.constant dense<0.000000e+00> : vector<8x128xf32>
    %4 = tpu.matmul %3, %1, %cst {dimension_numbers = #tpu.dot_dimension_numbers<[1], [0], [0], [1], [0, 0, 1, 1], [], []>} : vector<8x256xbf16>, vector<256x128xbf16>, vector<8x128xf32> -> vector<8x128xf32>
    %5 = vector.broadcast %2 : vector<1x128xf32> to vector<8x128xf32>
    %6 = arith.addf %4, %5 : vector<8x128xf32>
    %cst_5 = arith.constant 0.000000e+00 : f32
    %7 = vector.broadcast %cst_5 : f32 to vector<8x128xf32>
    %8 = arith.maximumf %6, %7 : vector<8x128xf32>
    %c0_6 = arith.constant 0 : index
    %c0_7 = arith.constant 0 : index
    %9 = vector.load %arg4[%c0_6, %c0_7] : memref<128x128xbf16, #tpu.memory_space<vmem>>, vector<128x128xbf16>
    %c0_8 = arith.constant 0 : index
    %c0_9 = arith.constant 0 : index
    %10 = vector.load %arg5[%c0_8, %c0_9] : memref<1x128xf32, #tpu.memory_space<vmem>>, vector<1x128xf32>
    %11 = arith.truncf %8 : vector<8x128xf32> to vector<8x128xbf16>
    %cst_10 = arith.constant dense<0.000000e+00> : vector<8x128xf32>
    %12 = tpu.matmul %11, %9, %cst_10 {dimension_numbers = #tpu.dot_dimension_numbers<[1], [0], [0], [1], [0, 0, 1, 1], [], []>} : vector<8x128xbf16>, vector<128x128xbf16>, vector<8x128xf32> -> vector<8x128xf32>
    %13 = vector.broadcast %10 : vector<1x128xf32> to vector<8x128xf32>
    %14 = arith.addf %12, %13 : vector<8x128xf32>
    %cst_11 = arith.constant 0.000000e+00 : f32
    %15 = vector.broadcast %cst_11 : f32 to vector<8x128xf32>
    %16 = arith.maximumf %14, %15 : vector<8x128xf32>
    %c0_12 = arith.constant 0 : index
    %c0_13 = arith.constant 0 : index
    %17 = vector.load %arg6[%c0_12, %c0_13] : memref<128x128xbf16, #tpu.memory_space<vmem>>, vector<128x128xbf16>
    %c0_14 = arith.constant 0 : index
    %c0_15 = arith.constant 0 : index
    %18 = vector.load %arg7[%c0_14, %c0_15] : memref<1x128xf32, #tpu.memory_space<vmem>>, vector<1x128xf32>
    %19 = arith.truncf %16 : vector<8x128xf32> to vector<8x128xbf16>
    %cst_16 = arith.constant dense<0.000000e+00> : vector<8x128xf32>
    %20 = tpu.matmul %19, %17, %cst_16 {dimension_numbers = #tpu.dot_dimension_numbers<[1], [0], [0], [1], [0, 0, 1, 1], [], []>} : vector<8x128xbf16>, vector<128x128xbf16>, vector<8x128xf32> -> vector<8x128xf32>
    %21 = vector.broadcast %18 : vector<1x128xf32> to vector<8x128xf32>
    %22 = arith.addf %20, %21 : vector<8x128xf32>
    %cst_17 = arith.constant 0.000000e+00 : f32
    %23 = vector.broadcast %cst_17 : f32 to vector<8x128xf32>
    %24 = arith.maximumf %22, %23 : vector<8x128xf32>
    %c0_18 = arith.constant 0 : index
    %c0_19 = arith.constant 0 : index
    %25 = vector.load %arg8[%c0_18, %c0_19] : memref<128x128xbf16, #tpu.memory_space<vmem>>, vector<128x128xbf16>
    %c0_20 = arith.constant 0 : index
    %c0_21 = arith.constant 0 : index
    %26 = vector.load %arg9[%c0_20, %c0_21] : memref<1x128xf32, #tpu.memory_space<vmem>>, vector<1x128xf32>
    %27 = arith.truncf %24 : vector<8x128xf32> to vector<8x128xbf16>
    %cst_22 = arith.constant dense<0.000000e+00> : vector<8x128xf32>
    %28 = tpu.matmul %27, %25, %cst_22 {dimension_numbers = #tpu.dot_dimension_numbers<[1], [0], [0], [1], [0, 0, 1, 1], [], []>} : vector<8x128xbf16>, vector<128x128xbf16>, vector<8x128xf32> -> vector<8x128xf32>
    %29 = vector.broadcast %26 : vector<1x128xf32> to vector<8x128xf32>
    %30 = arith.addf %28, %29 : vector<8x128xf32>
    %cst_23 = arith.constant 0.000000e+00 : f32
    %31 = vector.broadcast %cst_23 : f32 to vector<8x128xf32>
    %32 = arith.maximumf %30, %31 : vector<8x128xf32>
    %c0_24 = arith.constant 0 : index
    %c0_25 = arith.constant 0 : index
    %33 = vector.load %arg10[%c0_24, %c0_25] : memref<128x128xbf16, #tpu.memory_space<vmem>>, vector<128x128xbf16>
    %c0_26 = arith.constant 0 : index
    %c0_27 = arith.constant 0 : index
    %34 = vector.load %arg11[%c0_26, %c0_27] : memref<1x128xf32, #tpu.memory_space<vmem>>, vector<1x128xf32>
    %35 = arith.truncf %32 : vector<8x128xf32> to vector<8x128xbf16>
    %cst_28 = arith.constant dense<0.000000e+00> : vector<8x128xf32>
    %36 = tpu.matmul %35, %33, %cst_28 {dimension_numbers = #tpu.dot_dimension_numbers<[1], [0], [0], [1], [0, 0, 1, 1], [], []>} : vector<8x128xbf16>, vector<128x128xbf16>, vector<8x128xf32> -> vector<8x128xf32>
    %37 = vector.broadcast %34 : vector<1x128xf32> to vector<8x128xf32>
    %38 = arith.addf %36, %37 : vector<8x128xf32>
    %cst_29 = arith.constant 0.000000e+00 : f32
    %39 = vector.broadcast %cst_29 : f32 to vector<8x128xf32>
    %40 = arith.maximumf %38, %39 : vector<8x128xf32>
    %c0_30 = arith.constant 0 : index
    %c0_31 = arith.constant 0 : index
    %41 = vector.load %arg12[%c0_30, %c0_31] : memref<128x256xbf16, #tpu.memory_space<vmem>>, vector<128x256xbf16>
    %c0_32 = arith.constant 0 : index
    %c0_33 = arith.constant 0 : index
    %42 = vector.load %arg13[%c0_32, %c0_33] : memref<1x256xf32, #tpu.memory_space<vmem>>, vector<1x256xf32>
    %43 = arith.truncf %40 : vector<8x128xf32> to vector<8x128xbf16>
    %cst_34 = arith.constant dense<0.000000e+00> : vector<8x256xf32>
    %44 = tpu.matmul %43, %41, %cst_34 {dimension_numbers = #tpu.dot_dimension_numbers<[1], [0], [0], [1], [0, 0, 1, 1], [], []>} : vector<8x128xbf16>, vector<128x256xbf16>, vector<8x256xf32> -> vector<8x256xf32>
    %45 = vector.broadcast %42 : vector<1x256xf32> to vector<8x256xf32>
    %46 = arith.addf %44, %45 : vector<8x256xf32>
    %cst_35 = arith.constant 0.000000e+00 : f32
    %47 = vector.broadcast %cst_35 : f32 to vector<8x256xf32>
    %48 = arith.maximumf %46, %47 : vector<8x256xf32>
    %c0_36 = arith.constant 0 : index
    %c0_37 = arith.constant 0 : index
    %49 = vector.load %arg14[%c0_36, %c0_37] : memref<256x256xbf16, #tpu.memory_space<vmem>>, vector<256x256xbf16>
    %c0_38 = arith.constant 0 : index
    %c0_39 = arith.constant 0 : index
    %50 = vector.load %arg15[%c0_38, %c0_39] : memref<1x256xf32, #tpu.memory_space<vmem>>, vector<1x256xf32>
    %51 = arith.truncf %48 : vector<8x256xf32> to vector<8x256xbf16>
    %cst_40 = arith.constant dense<0.000000e+00> : vector<8x256xf32>
    %52 = tpu.matmul %51, %49, %cst_40 {dimension_numbers = #tpu.dot_dimension_numbers<[1], [0], [0], [1], [0, 0, 1, 1], [], []>} : vector<8x256xbf16>, vector<256x256xbf16>, vector<8x256xf32> -> vector<8x256xf32>
    %53 = vector.broadcast %50 : vector<1x256xf32> to vector<8x256xf32>
    %54 = arith.addf %52, %53 : vector<8x256xf32>
    %55 = arith.negf %54 : vector<8x256xf32>
    %56 = math.exp %55 : vector<8x256xf32>
    %cst_41 = arith.constant 1.000000e+00 : f32
    %57 = vector.broadcast %cst_41 : f32 to vector<8x256xf32>
    %58 = arith.addf %57, %56 : vector<8x256xf32>
    %59 = arith.divf %57, %58 : vector<8x256xf32>
    %c0_42 = arith.constant 0 : index
    %c0_43 = arith.constant 0 : index
    %60 = vector.load %arg16[%c0_42, %c0_43] : memref<8x256xf32, #tpu.memory_space<vmem>>, vector<8x256xf32>
    tpu.vector_store %arg16[%c0_42, %c0_43], %59 {strides = array<i32>} : memref<8x256xf32, #tpu.memory_space<vmem>>, vector<8x256xf32>,
    return
  }
  func.func @transform_0(%arg0: i32) -> (i32, i32) {
    %c0_i32 = arith.constant 0 : i32
    %c0_i32_0 = arith.constant 0 : i32
    return %arg0, %c0_i32 : i32, i32
  }
  func.func @transform_1(%arg0: i32) -> (i32, i32) {
    %c0_i32 = arith.constant 0 : i32
    %c0_i32_0 = arith.constant 0 : i32
    %c0_i32_1 = arith.constant 0 : i32
    return %c0_i32, %c0_i32_0 : i32, i32
  }
  func.func @transform_2(%arg0: i32) -> (i32, i32) {
    %c0_i32 = arith.constant 0 : i32
    %c0_i32_0 = arith.constant 0 : i32
    %c0_i32_1 = arith.constant 0 : i32
    return %c0_i32, %c0_i32_0 : i32, i32
  }
  func.func @transform_3(%arg0: i32) -> (i32, i32) {
    %c0_i32 = arith.constant 0 : i32
    %c0_i32_0 = arith.constant 0 : i32
    %c0_i32_1 = arith.constant 0 : i32
    return %c0_i32, %c0_i32_0 : i32, i32
  }
  func.func @transform_4(%arg0: i32) -> (i32, i32) {
    %c0_i32 = arith.constant 0 : i32
    %c0_i32_0 = arith.constant 0 : i32
    %c0_i32_1 = arith.constant 0 : i32
    return %c0_i32, %c0_i32_0 : i32, i32
  }
  func.func @transform_5(%arg0: i32) -> (i32, i32) {
    %c0_i32 = arith.constant 0 : i32
    %c0_i32_0 = arith.constant 0 : i32
    %c0_i32_1 = arith.constant 0 : i32
    return %c0_i32, %c0_i32_0 : i32, i32
  }
  func.func @transform_6(%arg0: i32) -> (i32, i32) {
    %c0_i32 = arith.constant 0 : i32
    %c0_i32_0 = arith.constant 0 : i32
    %c0_i32_1 = arith.constant 0 : i32
    return %c0_i32, %c0_i32_0 : i32, i32
  }
  func.func @transform_7(%arg0: i32) -> (i32, i32) {
    %c0_i32 = arith.constant 0 : i32
    %c0_i32_0 = arith.constant 0 : i32
    %c0_i32_1 = arith.constant 0 : i32
    return %c0_i32, %c0_i32_0 : i32, i32
  }
  func.func @transform_8(%arg0: i32) -> (i32, i32) {
    %c0_i32 = arith.constant 0 : i32
    %c0_i32_0 = arith.constant 0 : i32
    %c0_i32_1 = arith.constant 0 : i32
    return %c0_i32, %c0_i32_0 : i32, i32
  }
  func.func @transform_9(%arg0: i32) -> (i32, i32) {
    %c0_i32 = arith.constant 0 : i32
    %c0_i32_0 = arith.constant 0 : i32
    %c0_i32_1 = arith.constant 0 : i32
    return %c0_i32, %c0_i32_0 : i32, i32
  }
  func.func @transform_10(%arg0: i32) -> (i32, i32) {
    %c0_i32 = arith.constant 0 : i32
    %c0_i32_0 = arith.constant 0 : i32
    %c0_i32_1 = arith.constant 0 : i32
    return %c0_i32, %c0_i32_0 : i32, i32
  }
  func.func @transform_11(%arg0: i32) -> (i32, i32) {
    %c0_i32 = arith.constant 0 : i32
    %c0_i32_0 = arith.constant 0 : i32
    %c0_i32_1 = arith.constant 0 : i32
    return %c0_i32, %c0_i32_0 : i32, i32
  }
  func.func @transform_12(%arg0: i32) -> (i32, i32) {
    %c0_i32 = arith.constant 0 : i32
    %c0_i32_0 = arith.constant 0 : i32
    %c0_i32_1 = arith.constant 0 : i32
    return %c0_i32, %c0_i32_0 : i32, i32
  }
  func.func @transform_13(%arg0: i32) -> (i32, i32) {
    %c0_i32 = arith.constant 0 : i32
    %c0_i32_0 = arith.constant 0 : i32
    %c0_i32_1 = arith.constant 0 : i32
    return %c0_i32, %c0_i32_0 : i32, i32
  }
  func.func @transform_14(%arg0: i32) -> (i32, i32) {
    %c0_i32 = arith.constant 0 : i32
    %c0_i32_0 = arith.constant 0 : i32
    %c0_i32_1 = arith.constant 0 : i32
    return %c0_i32, %c0_i32_0 : i32, i32
  }
  func.func @transform_15(%arg0: i32) -> (i32, i32) {
    %c0_i32 = arith.constant 0 : i32
    %c0_i32_0 = arith.constant 0 : i32
    return %arg0, %c0_i32 : i32, i32
  }
}

</mosaic_0001>

<bundles_post_ra>
// kernel: forward.1
= control target key start
LH: loop header
LB: loop body
LE: loop exit
PB: predicated region body
PF: predicated region fallthrough
CT: control target
= control target key end

     0   :  { %20 = vsyncpa [#allocation3], 0  ;;  %s2087_s0 = inlined_call_operand.hbm [shape: f32[8,256], index: 0, kind: input, shape index: {}]   ;;  %s2088_s1 = inlined_call_operand.hbm [shape: bf16[256,128], index: 1, kind: input, shape index: {}]   ;;  %s2089_s2 = inlined_call_operand.hbm [shape: f32[1,128], index: 2, kind: input, shape index: {}]   ;;  %s2090_s3 = inlined_call_operand.hbm [shape: bf16[128,128], index: 3, kind: input, shape index: {}]   ;;  %s2091_s4 = inlined_call_operand.hbm [shape: f32[1,128], index: 4, kind: input, shape index: {}]   ;;  %s2092_s5 = inlined_call_operand.hbm [shape: bf16[128,128], index: 5, kind: input, shape index: {}]   ;;  %s2093_s6 = inlined_call_operand.vmem [shape: f32[1,128], index: 6, kind: input, shape index: {}]   ;;  %s2094_s7 = inlined_call_operand.hbm [shape: bf16[128,128], index: 7, kind: input, shape index: {}]   ;;  %s2095_s8 = inlined_call_operand.vmem [shape: f32[1,128], index: 8, kind: input, shape index: {}]   ;;  %s2096_s9 = inlined_call_operand.hbm [shape: bf16[128,128], index: 9, kind: input, shape index: {}]   ;;  %s2097_s10 = inlined_call_operand.vmem [shape: f32[1,128], index: 10, kind: input, shape index: {}]   ;;  %s2098_s11 = inlined_call_operand.hbm [shape: bf16[128,256], index: 11, kind: input, shape index: {}]   ;;  %s2099_s12 = inlined_call_operand.vmem [shape: f32[1,256], index: 12, kind: input, shape index: {}]   ;;  %s2100_s13 = inlined_call_operand.hbm [shape: bf16[256,256], index: 13, kind: input, shape index: {}]   ;;  %s2101_s14 = inlined_call_operand.vmem [shape: f32[1,256], index: 14, kind: input, shape index: {}]   ;;  %s2102_s15 = inlined_call_operand.hbm [shape: f32[8,256], index: 15, kind: output, shape index: {}]  }
   0x1   :  { %21 = vsyncpa [#allocation6], 0 }
   0x2   :  { %22 = vsyncpa [#allocation9], 0 }
   0x3   :  { %23 = vsyncpa [#allocation12], 0 }
   0x4   :  { %24 = vsyncpa [#allocation15], 0 }
   0x5   :  { %25 = vsyncpa [#allocation18], 0  ;;  %s42_s20 = sshll.u32 %s2088_s1, 4  ;;  %s43_s20 = int_to_ptr.hbm [resolvable:$true] %s42_s20 }
   0x6   :  { %26 = vsyncpa [#allocation4], 0  ;;  %s1929_s21 = smov [#allocation5]   ;;  %s66_s25 = sshll.u32 %s2090_s3, 4  ;;  %s67_s25 = int_to_ptr.hbm [resolvable:$true] %s66_s25 }
   0x7   :  { %s44_s22 = sshll.u32 %s1929_s21, 4  ;;  %s1930_s26 = smov 64   ;;  %s45_s22 = int_to_ptr.vmem [resolvable:$true] %s44_s22 }
   0x8   :  { %s1931_s27 = smov 4   ;;  %s1932_s28 = smov [#allocation8]  }
   0x9   :  { %50 = dma.hbm_to_vmem [thread:$0]  %s43_s20, 2048, %s45_s22, [#allocation6], %s1930_s26, %s1930_s26, %s1931_s27  }
   0xa   :  { %s68_s29 = sshll.u32 %s1932_s28, 4  ;;  %s90_s16 = sshll.u32 %s2092_s5, 4  ;;  %s69_s29 = int_to_ptr.vmem [resolvable:$true] %s68_s29  ;;  %s91_s16 = int_to_ptr.hbm [resolvable:$true] %s90_s16 }
   0xb   :  { %74 = dma.hbm_to_vmem [thread:$0]  %s67_s25, 1024, %s69_s29, [#allocation9], %s1930_s26, %s1930_s26, %s1931_s27  }
   0xc   :  { %s120_s18 = sshll.u32 %s2096_s9, 4  ;;  %s1933_s19 = smov [#allocation11]   ;;  %s121_s18 = int_to_ptr.hbm [resolvable:$true] %s120_s18 }
   0xd   :  { %s92_s21 = sshll.u32 %s1933_s19, 4  ;;  %s1934_s20 = smov [#allocation14]   ;;  %s93_s21 = int_to_ptr.vmem [resolvable:$true] %s92_s21 }
   0xe   :  { %98 = dma.hbm_to_vmem [thread:$0]  %s91_s16, 1024, %s93_s21, [#allocation12], %s1930_s26, %s1930_s26, %s1931_s27  }
   0xf   :  { %s122_s5 = sshll.u32 %s1934_s20, 4  ;;  %s32_s24 = sshll.u32 %s2087_s0, 4  ;;  %s123_s5 = int_to_ptr.vmem [resolvable:$true] %s122_s5  ;;  %s33_s24 = int_to_ptr.hbm [resolvable:$true] %s32_s24 }
  0x10   :  { %128 = dma.hbm_to_vmem [thread:$0]  %s121_s18, 1024, %s123_s5, [#allocation15], %s1930_s26, %s1930_s26, %s1931_s27  }
  0x11   :  { %s56_s28 = sshll.u32 %s2089_s2, 4  ;;  %s1935_s29 = smov [#allocation2]   ;;  %s57_s28 = int_to_ptr.hbm [resolvable:$true] %s56_s28 }
  0x12   :  { %s34_s30 = sshll.u32 %s1935_s29, 4  ;;  %s1936_s1 = smov [#allocation7]   ;;  %s35_s30 = int_to_ptr.vmem [resolvable:$true] %s34_s30 }
  0x13   :  { %37 = dma.hbm_to_vmem [thread:$0]  %s33_s24, 256, %s35_s30, [#allocation3]  }
  0x14   :  { %s58_s16 = sshll.u32 %s1936_s1, 4  ;;  %s80_s0 = sshll.u32 %s2091_s4, 4  ;;  %s59_s16 = int_to_ptr.vmem [resolvable:$true] %s58_s16  ;;  %s81_s0 = int_to_ptr.hbm [resolvable:$true] %s80_s0 }
  0x15   :  { %61 = dma.hbm_to_vmem [thread:$0]  %s57_s28, 16, %s59_s16, [#allocation6]  }
  0x16   :  { %s105_s21 = sshll.u32 %s2094_s7, 4  ;;  %s1937_s20 = smov [#allocation10]   ;;  %s106_s21 = int_to_ptr.hbm [resolvable:$true] %s105_s21 }
  0x17   :  { %s82_s2 = sshll.u32 %s1937_s20, 4  ;;  %s1938_s5 = smov [#allocation13]   ;;  %s83_s2 = int_to_ptr.vmem [resolvable:$true] %s82_s2 }
  0x18   :  { %85 = dma.hbm_to_vmem [thread:$0]  %s81_s0, 16, %s83_s2, [#allocation9]  }
  0x19   :  { %s107_s22 = sshll.u32 %s1938_s5, 4  ;;  %s135_s9 = sshll.u32 %s2098_s11, 4  ;;  %s108_s22 = int_to_ptr.vmem [resolvable:$true] %s107_s22  ;;  %s136_s9 = int_to_ptr.hbm [resolvable:$true] %s135_s9 }
  0x1a   :  { %113 = dma.hbm_to_vmem [thread:$0]  %s106_s21, 1024, %s108_s22, [#allocation12], %s1930_s26, %s1930_s26, %s1931_s27  }
  0x1b   :  { %s1939_s4 = smov [#allocation16]   ;;  %s150_s29 = sshll.u32 %s2100_s13, 4  ;;  %s151_s29 = int_to_ptr.hbm [resolvable:$true] %s150_s29 }
  0x1c   :  { %s137_s25 = sshll.u32 %s1939_s4, 4  ;;  %s1940_s30 = smov 128   ;;  %s138_s25 = int_to_ptr.vmem [resolvable:$true] %s137_s25 }
  0x1d   :  { %s1941_s1 = smov 8   ;;  %s1942_s16 = smov [#allocation17]  }
  0x1e   :  { %143 = dma.hbm_to_vmem [thread:$0]  %s136_s9, 2048, %s138_s25, [#allocation15], %s1940_s30, %s1940_s30, %s1941_s1  }
  0x1f   :  { %s152_s3 = sshll.u32 %s1942_s16, 4  ;;  %s153_s3 = int_to_ptr.vmem [resolvable:$true] %s152_s3 }
  0x20   :  { %158 = dma.hbm_to_vmem [thread:$0]  %s151_s29, 4096, %s153_s3, [#allocation18], %s1940_s30, %s1940_s30, %s1941_s1  }
  0x21   :  { %1915 = dma.done.wait [#allocation3], 256  }
  0x22   :  { %1916 = vsyncadd [#allocation3], 4294967040 }
  0x23   :  { %1917 = dma.done.wait [#allocation6], 2064  }
  0x24   :  { %1918 = vsyncadd [#allocation6], 4294965232 }
  0x25   :  { %1919 = dma.done.wait [#allocation9], 1040  }
  0x26   :  { %1920 = vsyncadd [#allocation9], 4294966256 }
  0x27   :  { %1921 = dma.done.wait [#allocation12], 2048  }
  0x28   :  { %1922 = vsyncadd [#allocation12], 4294965248 }
  0x29   :  { %1923 = dma.done.wait [#allocation15], 3072  }
  0x2a   :  { %1924 = vsyncadd [#allocation15], 4294964224 }
  0x2b   :  { %1925 = dma.done.wait [#allocation18], 4096  }
  0x2c   :  { %1926 = vsyncadd [#allocation18], 4294963200  ;;  %v1534_v0 = vld [vmem:[#allocation5 + $0x38] sm:$0xff]  ;;  %v1533_v2 = vld [vmem:[#allocation5 + $0x30] sm:$0xff]  ;;  %s1126_s20 = sshll.u32 %s2102_s15, 4  ;;  %s1127_s20 = int_to_ptr.hbm [resolvable:$true] %s1126_s20 }
  0x2d   :  { %v1542_v1 = vld [vmem:[#allocation5 + $0x78] sm:$0xff]  ;;  %337 = vmatpush.bf16.msra.mxu0 %v1534_v0  ;;  %v1541_v3 = vld [vmem:[#allocation5 + $0x70] sm:$0xff]  ;;  %v1532_v4 = vld [vmem:[#allocation5 + $0x28] sm:$0xff] }
  0x2e   :  { %350 = vmatpush.bf16.msra.mxu1 %v1542_v1  ;;  %v1540_v5 = vld [vmem:[#allocation5 + $0x68] sm:$0xff]  ;;  %v1550_v6 = vld [vmem:[#allocation8 + $0x38] sm:$0xff]  ;;  %v1549_v7 = vld [vmem:[#allocation8 + $0x30] sm:$0xff] }
  0x2f   :  { %433 = vmatpush.bf16.msra.mxu2 %v1550_v6  ;;  %v1531_v8 = vld [vmem:[#allocation5 + $0x20] sm:$0xff]  ;;  %v1548_v10 = vld [vmem:[#allocation8 + $0x28] sm:$0xff]  ;;  %v1530_v11 = vld [vmem:[#allocation5 + $0x18] sm:$0xff] }
  0x30   :  { %v1539_v9 = vld [vmem:[#allocation5 + $0x60] sm:$0xff]  ;;  %v1538_v12 = vld [vmem:[#allocation5 + $0x58] sm:$0xff]  ;;  %v1529_v14 = vld [vmem:[#allocation5 + $0x10] sm:$0xff] }
  0x31   :  { %338 = vmatpush.bf16.msra.mxu0 %v1533_v2  ;;  %v1547_v13 = vld [vmem:[#allocation8 + $0x20] sm:$0xff]  ;;  %v1537_v15 = vld [vmem:[#allocation5 + $0x50] sm:$0xff]  ;;  %v1546_v16 = vld [vmem:[#allocation8 + $0x18] sm:$0xff] }
  0x32   :  { %351 = vmatpush.bf16.msra.mxu1 %v1541_v3  ;;  %v1528_v17 = vld [vmem:[#allocation5 + $0x8] sm:$0xff]  ;;  %v1545_v19 = vld [vmem:[#allocation8 + $0x10] sm:$0xff]  ;;  %v1527_v20 = vld [vmem:[#allocation5] sm:$0xff] }
  0x33   :  { %434 = vmatpush.bf16.msra.mxu2 %v1549_v7  ;;  %v1536_v18 = vld [vmem:[#allocation5 + $0x48] sm:$0xff]  ;;  %v1535_v21 = vld [vmem:[#allocation5 + $0x40] sm:$0xff]  ;;  %v201_v22 = vld [vmem:[#allocation2] sm:$0xff] }
  0x34   :  { %v202_v23 = vld [vmem:[#allocation2 + $0x8] sm:$0xff]  ;;  %v236_v24 = vpack.c.bf16 %v201_v22, %v201_v22  ;;  %v1544_v26 = vld [vmem:[#allocation8 + $0x8] sm:$0xff]  ;;  %v1543_v27 = vld [vmem:[#allocation8] sm:$0xff] }
  0x35   :  { %339 = vmatpush.bf16.msra.mxu0 %v1532_v4  ;;  %v237_v25 = vpack.c.bf16 %v202_v23, %v202_v23  ;;  %v1558_v28 = vld [vmem:[#allocation11 + $0x38] sm:$0xff]  ;;  %v1557_v29 = vld [vmem:[#allocation11 + $0x30] sm:$0xff]  ;;  %v1556_v30 = vld [vmem:[#allocation11 + $0x28] sm:$0xff] }
  0x36   :  { %352 = vmatpush.bf16.msra.mxu1 %v1540_v5  ;;  %516 = vmatpush.bf16.msra.mxu3 %v1558_v28  ;;  %v1555_v31 = vld [vmem:[#allocation11 + $0x20] sm:$0xff]  ;;  %v1554_v32 = vld [vmem:[#allocation11 + $0x18] sm:$0xff]  ;;  %v1553_v33 = vld [vmem:[#allocation11 + $0x10] sm:$0xff] }
  0x37   :  { %435 = vmatpush.bf16.msra.mxu2 %v1548_v10  ;;  %v1638_v34 = vld [vmem:[#allocation7] ss:$0 sm:$0xff]  ;;  %v1552_v43 = vld [vmem:[#allocation11 + $0x8] sm:$0xff]  ;;  %v1551_v44 = vld [vmem:[#allocation11] sm:$0xff] }
  0x38   :  { %v1566_v45 = vld [vmem:[#allocation13 + $0x38] sm:$0xff]  ;;  %v1565_v46 = vld [vmem:[#allocation13 + $0x30] sm:$0xff]  ;;  %v1564_v47 = vld [vmem:[#allocation13 + $0x28] sm:$0xff] }
  0x39   :  { %340 = vmatpush.bf16.msra.mxu0 %v1531_v8  ;;  %v1563_v48 = vld [vmem:[#allocation13 + $0x20] sm:$0xff]  ;;  %v1562_v49 = vld [vmem:[#allocation13 + $0x18] sm:$0xff]  ;;  %v1561_v50 = vld [vmem:[#allocation13 + $0x10] sm:$0xff] }
  0x3a   :  { %353 = vmatpush.bf16.msra.mxu1 %v1539_v9  ;;  %517 = vmatpush.bf16.msra.mxu3 %v1557_v29  ;;  %v1639_v51 = vld [vmem:[#allocation10] ss:$0 sm:$0xff]  ;;  %v1560_v57 = vld [vmem:[#allocation13 + $0x8] sm:$0xff]  ;;  %v1559_v58 = vld [vmem:[#allocation13] sm:$0xff] }
  0x3b   :  { %436 = vmatpush.bf16.msra.mxu2 %v1547_v13  ;;  %v1574_v59 = vld [vmem:[#allocation14 + $0x38] sm:$0xff]  ;;  %v1573_v60 = vld [vmem:[#allocation14 + $0x30] sm:$0xff]  ;;  %v1572_v61 = vld [vmem:[#allocation14 + $0x28] sm:$0xff] }
  0x3c   :  { %v1571_v62 = vld [vmem:[#allocation14 + $0x20] sm:$0xff]  ;;  %v1570_v63 = vld [vmem:[#allocation14 + $0x18] sm:$0xff]  ;;  %v1569_v0 = vld [vmem:[#allocation14 + $0x10] sm:$0xff] }
  0x3d   :  { %341 = vmatpush.bf16.msra.mxu0 %v1530_v11  ;;  %v1640_v1 = vld [vmem:[%s2093_s6] ss:$0 sm:$0xff]  ;;  %v1567_v8 = vld [vmem:[#allocation14] sm:$0xff]  ;;  %v1391_v9 = vld [vmem:[#allocation16 + $0x70] sm:$0xf] }
  0x3e   :  { %354 = vmatpush.bf16.msra.mxu1 %v1538_v12  ;;  %518 = vmatpush.bf16.msra.mxu3 %v1556_v30  ;;  %v1568_v7 = vld [vmem:[#allocation14 + $0x8] sm:$0xff]  ;;  %v1590_v10 = vld [vmem:[#allocation16 + $0x74] sm:$0xf0]  ;;  %v1589_v11 = vld [vmem:[#allocation16 + $0x74] sm:$0xf] }
  0x3f   :  { %437 = vmatpush.bf16.msra.mxu2 %v1546_v16  ;;  %v1392_v12 = vor.u32 %v1590_v10, %v1391_v9  ;;  %v1393_v13 = vld [vmem:[#allocation16 + $0x78] sm:$0xf0]  ;;  %v1586_v22 = vld [vmem:[#allocation16 + $0x54] sm:$0xf0]  ;;  %v1585_v23 = vld [vmem:[#allocation16 + $0x54] sm:$0xf] }
  0x40   :  { %v1396_v16 = vor.u32 %v1589_v11, %v1393_v13  ;;  %v1584_v28 = vld [vmem:[#allocation16 + $0x44] sm:$0xf0]  ;;  %v1583_v29 = vld [vmem:[#allocation16 + $0x44] sm:$0xf]  ;;  %v1369_v30 = vld [vmem:[#allocation16 + $0x48] sm:$0xf0] }
  0x41   :  { %342 = vmatpush.bf16.msra.mxu0 %v1529_v14  ;;  %v1383_v14 = vld [vmem:[#allocation16 + $0x60] sm:$0xf]  ;;  %v1521_v9 = vld [vmem:[#allocation17 + $0xf8] sm:$0xf0] }
  0x42   :  { %355 = vmatpush.bf16.msra.mxu1 %v1537_v15  ;;  %519 = vmatpush.bf16.msra.mxu3 %v1555_v31  ;;  %v1588_v15 = vld [vmem:[#allocation16 + $0x64] sm:$0xf0]  ;;  %v1447_v10 = vld [vmem:[#allocation17 + $0x60] sm:$0xf] }
  0x43   :  { %438 = vmatpush.bf16.msra.mxu2 %v1545_v19  ;;  %v1384_v19 = vor.u32 %v1588_v15, %v1383_v14  ;;  %v1511_v13 = vld [vmem:[#allocation17 + $0xe0] sm:$0xf]  ;;  %v1620_v14 = vld [vmem:[#allocation17 + $0xe4] sm:$0xf0] }
  0x45   :  { %343 = vmatpush.bf16.msra.mxu0 %v1528_v17  ;;  %v1587_v17 = vld [vmem:[#allocation16 + $0x64] sm:$0xf] }
  0x46   :  { %356 = vmatpush.bf16.msra.mxu1 %v1536_v18  ;;  %520 = vmatpush.bf16.msra.mxu3 %v1554_v32  ;;  %v1385_v18 = vld [vmem:[#allocation16 + $0x68] sm:$0xf0]  ;;  %v1372_v32 = vor.u32 %v1583_v29, %v1369_v30  ;;  %v1441_v29 = vld [vmem:[#allocation17 + $0x58] sm:$0xf0]  ;;  %v1617_v30 = vld [vmem:[#allocation17 + $0xd4] sm:$0xf] }
  0x47   :  { %439 = vmatpush.bf16.msra.mxu2 %v1544_v26 }
  0x49   :  { %344 = vmatpush.bf16.msra.mxu0 %v1527_v20  ;;  %v1388_v20 = vor.u32 %v1587_v17, %v1385_v18  ;;  %v1603_v17 = vld [vmem:[#allocation17 + $0x64] sm:$0xf]  ;;  %v1449_v18 = vld [vmem:[#allocation17 + $0x68] sm:$0xf0] }
  0x4a   :  { %357 = vmatpush.bf16.msra.mxu1 %v1535_v21  ;;  %521 = vmatpush.bf16.msra.mxu3 %v1553_v33  ;;  %v1375_v21 = vld [vmem:[#allocation16 + $0x50] sm:$0xf] }
  0x4b   :  { %440 = vmatpush.bf16.msra.mxu2 %v1543_v27  ;;  %v1367_v27 = vld [vmem:[#allocation16 + $0x40] sm:$0xf]  ;;  %v1359_v33 = vld [vmem:[#allocation16 + $0x30] sm:$0xf] }
  0x4c   :  { %345 = vmatmul.bf16.vlgmr.msra.gmra.mxu0 %v236_v24  ;;  %v1377_v24 = vld [vmem:[#allocation16 + $0x58] sm:$0xf0]  ;;  %v1368_v31 = vor.u32 %v1584_v28, %v1367_v27  ;;  %v1601_v27 = vld [vmem:[#allocation17 + $0x54] sm:$0xf] }
  0x4d   :  { %358 = vmatmul.bf16.vlgmr.msra.gmra.mxu1 %v237_v25  ;;  %599 = vmatpush.bf16.msrb.mxu0 %v1566_v45  ;;  %v1376_v25 = vor.u32 %v1586_v22, %v1375_v21  ;;  %v1380_v26 = vor.u32 %v1585_v23, %v1377_v24  ;;  %v1641_v45 = vld [vmem:[%s2095_s8] ss:$0 sm:$0xff]  ;;  %v1439_v22 = vld [vmem:[#allocation17 + $0x50] sm:$0xf]  ;;  %v1602_v23 = vld [vmem:[#allocation17 + $0x54] sm:$0xf0] }
  0x4e   :  { %522 = vmatpush.bf16.msra.mxu3 %v1552_v43  ;;  %682 = vmatpush.bf16.msrb.mxu1 %v1574_v59  ;;  %v1575_v59 = vld [vmem:[#allocation16 + $0x4] sm:$0xf]  ;;  %v1513_v21 = vld [vmem:[#allocation17 + $0xe8] sm:$0xf0]  ;;  %v1440_v28 = vor.u32 %v1602_v23, %v1439_v22  ;;  %v1609_v22 = vld [vmem:[#allocation17 + $0x94] sm:$0xf] }
  0x4f   :  { %799 = vmatpush.bf16.msrb.mxu2 %v1392_v12  ;;  %v1604_v12 = vld [vmem:[#allocation17 + $0x64] sm:$0xf0]  ;;  %v1473_v23 = vld [vmem:[#allocation17 + $0x98] sm:$0xf0] }
  0x50   :  { %v1448_v15 = vor.u32 %v1604_v12, %v1447_v10 }
  0x51   :  { %600 = vmatpush.bf16.msrb.mxu0 %v1565_v46 }
  0x52   :  { %523 = vmatpush.bf16.msra.mxu3 %v1551_v44  ;;  %683 = vmatpush.bf16.msrb.mxu1 %v1573_v60 }
  0x53   :  { %800 = vmatpush.bf16.msrb.mxu2 %v1384_v19  ;;  %v1619_v19 = vld [vmem:[#allocation17 + $0xe4] sm:$0xf] }
  0x54   :  { %v1516_v24 = vor.u32 %v1619_v19, %v1513_v21  ;;  %v1409_v19 = vld [vmem:[#allocation17 + $0x18] sm:$0xf0] }
  0x55   :  { %601 = vmatpush.bf16.msrb.mxu0 %v1564_v47 }
  0x56   :  { %684 = vmatpush.bf16.msrb.mxu1 %v1572_v61  ;;  %812 = vmatpush.bf16.msrb.mxu3 %v1396_v16  ;;  %v1337_v61 = vld [vmem:[#allocation16 + $0x8] sm:$0xf0]  ;;  %v1512_v16 = vor.u32 %v1620_v14, %v1511_v13  ;;  %v1407_v13 = vld [vmem:[#allocation17 + $0x10] sm:$0xf]  ;;  %v1594_v14 = vld [vmem:[#allocation17 + $0x14] sm:$0xf0] }
  0x57   :  { %801 = vmatpush.bf16.msrb.mxu2 %v1376_v25  ;;  %v1503_v25 = vld [vmem:[#allocation17 + $0xd0] sm:$0xf] }
  0x59   :  { %602 = vmatpush.bf16.msrb.mxu0 %v1563_v48 }
  0x5a   :  { %685 = vmatpush.bf16.msrb.mxu1 %v1571_v62  ;;  %813 = vmatpush.bf16.msrb.mxu3 %v1388_v20  ;;  %v1340_v62 = vor.u32 %v1575_v59, %v1337_v61  ;;  %v1452_v20 = vor.u32 %v1603_v17, %v1449_v18  ;;  %v1596_v59 = vld [vmem:[#allocation17 + $0x24] sm:$0xf0]  ;;  %v1610_v17 = vld [vmem:[#allocation17 + $0x94] sm:$0xf0]  ;;  %v1593_v18 = vld [vmem:[#allocation17 + $0x14] sm:$0xf] }
  0x5b   :  { %802 = vmatpush.bf16.msrb.mxu2 %v1368_v31  ;;  %v1505_v31 = vld [vmem:[#allocation17 + $0xd8] sm:$0xf0]  ;;  %v1412_v21 = vor.u32 %v1593_v18, %v1409_v19 }
  0x5d   :  { %603 = vmatpush.bf16.msrb.mxu0 %v1562_v49 }
  0x5e   :  { %686 = vmatpush.bf16.msrb.mxu1 %v1570_v63  ;;  %814 = vmatpush.bf16.msrb.mxu3 %v1380_v26  ;;  %v1455_v63 = vld [vmem:[#allocation17 + $0x70] sm:$0xf]  ;;  %v1618_v26 = vld [vmem:[#allocation17 + $0xd4] sm:$0xf0] }
  0x61   :  { %604 = vmatpush.bf16.msrb.mxu0 %v1561_v50 }
  0x62   :  { %687 = vmatpush.bf16.msrb.mxu1 %v1569_v0  ;;  %815 = vmatpush.bf16.msrb.mxu3 %v1372_v32  ;;  %v1606_v0 = vld [vmem:[#allocation17 + $0x74] sm:$0xf0]  ;;  %v1504_v32 = vor.u32 %v1618_v26, %v1503_v25  ;;  %v1399_v25 = vld [vmem:[#allocation17] sm:$0xf]  ;;  %v1592_v26 = vld [vmem:[#allocation17 + $0x4] sm:$0xf0] }
  0x65   :  { %605 = vmatpush.bf16.msrb.mxu0 %v1560_v57  ;;  %v1335_v57 = vld [vmem:[#allocation16] sm:$0xf] }
  0x66   :  { %688 = vmatpush.bf16.msrb.mxu1 %v1568_v7 }
  0x69   :  { %606 = vmatpush.bf16.msrb.mxu0 %v1559_v58  ;;  %v1576_v58 = vld [vmem:[#allocation16 + $0x4] sm:$0xf0] }
  0x6a   :  { %689 = vmatpush.bf16.msrb.mxu1 %v1567_v8  ;;  %v1336_v60 = vor.u32 %v1576_v58, %v1335_v57  ;;  %v1621_v8 = vld [vmem:[#allocation17 + $0xf4] sm:$0xf]  ;;  %v1415_v58 = vld [vmem:[#allocation17 + $0x20] sm:$0xf] }
  0x6b   :  { %v1524_v11 = vor.u32 %v1621_v8, %v1521_v9 }
  0xc9   :  { %v346_v35 = vpop.f32.mrf.mxu0 }
  0xca   :  { %v359_v36 = vpop.f32.mrf.mxu1  ;;  %v347_v37 = vadd.f32 %v1638_v34, %v346_v35  ;;  %v1582_v34 = vld [vmem:[#allocation16 + $0x34] sm:$0xf0]  ;;  %v1581_v35 = vld [vmem:[#allocation16 + $0x34] sm:$0xf] }
  0xcc   :  { %v360_v38 = vadd.f32 %v359_v36, %v347_v37  ;;  %v1361_v36 = vld [vmem:[#allocation16 + $0x38] sm:$0xf0]  ;;  %v1360_v37 = vor.u32 %v1582_v34, %v1359_v33  ;;  %v1444_v33 = vor.u32 %v1601_v27, %v1441_v29  ;;  %v1431_v34 = vld [vmem:[#allocation17 + $0x40] sm:$0xf]  ;;  %v1608_v29 = vld [vmem:[#allocation17 + $0x84] sm:$0xf0] }
  0xcd   :  { %v1463_v27 = vld [vmem:[#allocation17 + $0x80] sm:$0xf] }
  0xce   :  { %v363_v39 = vmax.f32 %v360_v38, 0.0  ;;  %v1364_v38 = vor.u32 %v1581_v35, %v1361_v36  ;;  %803 = vmatpush.bf16.msrb.mxu2 %v1360_v37  ;;  %v1600_v35 = vld [vmem:[#allocation17 + $0x44] sm:$0xf0]  ;;  %v1495_v36 = vld [vmem:[#allocation17 + $0xc0] sm:$0xf]  ;;  %v1508_v37 = vor.u32 %v1617_v30, %v1505_v31 }
  0xcf   :  { %v1591_v30 = vld [vmem:[#allocation17 + $0x4] sm:$0xf]  ;;  %v1401_v31 = vld [vmem:[#allocation17 + $0x8] sm:$0xf0] }
  0xd0   :  { %v381_v40 = vpack.c.bf16 %v363_v39, %v363_v39  ;;  %v1351_v39 = vld [vmem:[#allocation16 + $0x20] sm:$0xf]  ;;  %816 = vmatpush.bf16.msrb.mxu3 %v1364_v38  ;;  %v1616_v38 = vld [vmem:[#allocation17 + $0xc4] sm:$0xf0] }
  0xd1   :  { %v348_v41 = vpop.f32.mrf.mxu0 }
  0xd2   :  { %v361_v42 = vpop.f32.mrf.mxu1  ;;  %441 = vmatmul.bf16.vlgmr.msra.gmra.mxu2 %v381_v40  ;;  %v1580_v40 = vld [vmem:[#allocation16 + $0x24] sm:$0xf0]  ;;  %v1579_v41 = vld [vmem:[#allocation16 + $0x24] sm:$0xf] }
  0xd3   :  { %v1353_v42 = vld [vmem:[#allocation16 + $0x28] sm:$0xf0]  ;;  %v1352_v43 = vor.u32 %v1580_v40, %v1351_v39  ;;  %v1599_v39 = vld [vmem:[#allocation17 + $0x44] sm:$0xf] }
  0xd4   :  { %v1356_v44 = vor.u32 %v1579_v41, %v1353_v42  ;;  %v1433_v40 = vld [vmem:[#allocation17 + $0x48] sm:$0xf0]  ;;  %v1615_v41 = vld [vmem:[#allocation17 + $0xc4] sm:$0xf] }
  0xd5   :  { %804 = vmatpush.bf16.msrb.mxu2 %v1352_v43  ;;  %v1497_v42 = vld [vmem:[#allocation17 + $0xc8] sm:$0xf0]  ;;  %v1432_v43 = vor.u32 %v1600_v35, %v1431_v34  ;;  %v1607_v34 = vld [vmem:[#allocation17 + $0x84] sm:$0xf] }
  0xd6   :  { %817 = vmatpush.bf16.msrb.mxu3 %v1356_v44  ;;  %v1496_v44 = vor.u32 %v1616_v38, %v1495_v36  ;;  %v1465_v35 = vld [vmem:[#allocation17 + $0x88] sm:$0xf0] }
  0xd7   :  { %v1468_v36 = vor.u32 %v1607_v34, %v1465_v35 }
 0x155   :  { %v442_v52 = vpop.f32.mrf.mxu2 }
 0x156   :  { %v443_v53 = vadd.f32 %v1639_v51, %v442_v52  ;;  %v1343_v51 = vld [vmem:[#allocation16 + $0x10] sm:$0xf]  ;;  %v1578_v52 = vld [vmem:[#allocation16 + $0x14] sm:$0xf0] }
 0x158   :  { %v446_v54 = vmax.f32 %v443_v53, 0.0  ;;  %v1577_v53 = vld [vmem:[#allocation16 + $0x14] sm:$0xf] }
 0x15a   :  { %v464_v55 = vpack.c.bf16 %v446_v54, %v446_v54  ;;  %v1344_v54 = vor.u32 %v1578_v52, %v1343_v51  ;;  %v1597_v51 = vld [vmem:[#allocation17 + $0x34] sm:$0xf]  ;;  %v1425_v52 = vld [vmem:[#allocation17 + $0x38] sm:$0xf0] }
 0x15b   :  { %v1428_v57 = vor.u32 %v1597_v51, %v1425_v52 }
 0x15c   :  { %524 = vmatmul.bf16.vlgmr.msra.gmra.mxu3 %v464_v55  ;;  %v1345_v55 = vld [vmem:[#allocation16 + $0x18] sm:$0xf0]  ;;  %805 = vmatpush.bf16.msrb.mxu2 %v1344_v54 }
 0x15d   :  { %v444_v56 = vpop.f32.mrf.mxu2  ;;  %v1489_v54 = vld [vmem:[#allocation17 + $0xb8] sm:$0xf0] }
 0x15e   :  { %v1348_v56 = vor.u32 %v1577_v53, %v1345_v55  ;;  %v1613_v53 = vld [vmem:[#allocation17 + $0xb4] sm:$0xf] }
 0x15f   :  { %v1492_v61 = vor.u32 %v1613_v53, %v1489_v54 }
 0x160   :  { %818 = vmatpush.bf16.msrb.mxu3 %v1348_v56  ;;  %806 = vmatpush.bf16.msrb.mxu2 %v1336_v60  ;;  %v1479_v60 = vld [vmem:[#allocation17 + $0xa0] sm:$0xf] }
 0x164   :  { %819 = vmatpush.bf16.msrb.mxu3 %v1340_v62  ;;  %v1612_v62 = vld [vmem:[#allocation17 + $0xa4] sm:$0xf0] }
 0x168   :  { %1066 = vmatpush.bf16.msra.mxu3 %v1524_v11 }
 0x16c   :  { %1067 = vmatpush.bf16.msra.mxu3 %v1516_v24  ;;  %v1476_v24 = vor.u32 %v1609_v22, %v1473_v23 }
 0x170   :  { %1068 = vmatpush.bf16.msra.mxu3 %v1508_v37  ;;  %v712_v37 = vld [vmem:[%s2099_s12] sm:$0x3]  ;;  %s1943_s12 = smov [#allocation19]  }
 0x171   :  { %v715_v38 = vperm.slane %v712_v37, 0 }
 0x1df   :  { %v525_v2 = vpop.f32.mrf.mxu3 }
 0x1e0   :  { %v526_v3 = vadd.f32 %v1640_v1, %v525_v2  ;;  %v1519_v1 = vld [vmem:[#allocation17 + $0xf0] sm:$0xf]  ;;  %v1456_v2 = vor.u32 %v1606_v0, %v1455_v63  ;;  %v1595_v63 = vld [vmem:[#allocation17 + $0x24] sm:$0xf]  ;;  %v1417_v0 = vld [vmem:[#allocation17 + $0x28] sm:$0xf0] }
 0x1e2   :  { %v529_v4 = vmax.f32 %v526_v3, 0.0  ;;  %v1622_v3 = vld [vmem:[#allocation17 + $0xf4] sm:$0xf0]  ;;  %1027 = vmatpush.bf16.msra.mxu0 %v1456_v2  ;;  %v1481_v2 = vld [vmem:[#allocation17 + $0xa8] sm:$0xf0] }
 0x1e4   :  { %v547_v5 = vpack.c.bf16 %v529_v4, %v529_v4  ;;  %v1605_v4 = vld [vmem:[#allocation17 + $0x74] sm:$0xf] }
 0x1e6   :  { %607 = vmatmul.bf16.vlgmr.msrb.gmra.mxu0 %v547_v5  ;;  %v1457_v5 = vld [vmem:[#allocation17 + $0x78] sm:$0xf0] }
 0x1e7   :  { %v527_v6 = vpop.f32.mrf.mxu3  ;;  %v1460_v7 = vor.u32 %v1605_v4, %v1457_v5  ;;  %1028 = vmatpush.bf16.msra.mxu0 %v1448_v15  ;;  %v1480_v4 = vor.u32 %v1612_v62, %v1479_v60  ;;  %v1420_v5 = vor.u32 %v1595_v63, %v1417_v0  ;;  %v1471_v15 = vld [vmem:[#allocation17 + $0x90] sm:$0xf] }
 0x1e8   :  { %v1520_v6 = vor.u32 %v1622_v3, %v1519_v1  ;;  %v1611_v1 = vld [vmem:[#allocation17 + $0xa4] sm:$0xf]  ;;  %v1416_v3 = vor.u32 %v1596_v59, %v1415_v58 }
 0x1e9   :  { %1053 = vmatpush.bf16.msra.mxu2 %v1460_v7  ;;  %v1484_v7 = vor.u32 %v1611_v1, %v1481_v2 }
 0x1ea   :  { %1040 = vmatpush.bf16.msra.mxu1 %v1520_v6  ;;  %v1642_v6 = vld [vmem:[%s2097_s10] ss:$0 sm:$0xff] }
 0x1eb   :  { %1029 = vmatpush.bf16.msra.mxu0 %v1440_v28  ;;  %v1400_v28 = vor.u32 %v1592_v26, %v1399_v25 }
 0x1ed   :  { %1054 = vmatpush.bf16.msra.mxu2 %v1452_v20  ;;  %v1472_v20 = vor.u32 %v1610_v17, %v1471_v15 }
 0x1ee   :  { %1041 = vmatpush.bf16.msra.mxu1 %v1512_v16  ;;  %v1408_v16 = vor.u32 %v1594_v14, %v1407_v13 }
 0x1ef   :  { %1030 = vmatpush.bf16.msra.mxu0 %v1432_v43 }
 0x1f1   :  { %1055 = vmatpush.bf16.msra.mxu2 %v1444_v33  ;;  %v1404_v33 = vor.u32 %v1591_v30, %v1401_v31 }
 0x1f2   :  { %1042 = vmatpush.bf16.msra.mxu1 %v1504_v32  ;;  %v1464_v32 = vor.u32 %v1608_v29, %v1463_v27 }
 0x1f6   :  { %1043 = vmatpush.bf16.msra.mxu1 %v1496_v44 }
 0x263   :  { %v608_v46 = vpop.f32.mrf.mxu0 }
 0x264   :  { %v609_v47 = vadd.f32 %v1641_v45, %v608_v46  ;;  %v1436_v45 = vor.u32 %v1599_v39, %v1433_v40  ;;  %v1423_v46 = vld [vmem:[#allocation17 + $0x30] sm:$0xf]  ;;  %v716_v39 = vperm.slane %v712_v37, 1 }
 0x266   :  { %v612_v48 = vmax.f32 %v609_v47, 0.0  ;;  %v1598_v47 = vld [vmem:[#allocation17 + $0x34] sm:$0xf0]  ;;  %1056 = vmatpush.bf16.msra.mxu2 %v1436_v45 }
 0x267   :  { %v1424_v55 = vor.u32 %v1598_v47, %v1423_v46 }
 0x268   :  { %v630_v49 = vpack.c.bf16 %v612_v48, %v612_v48  ;;  %v1487_v48 = vld [vmem:[#allocation17 + $0xb0] sm:$0xf] }
 0x269   :  { %1031 = vmatpush.bf16.msra.mxu0 %v1424_v55 }
 0x26a   :  { %690 = vmatmul.bf16.vlgmr.msrb.gmra.mxu1 %v630_v49  ;;  %v1500_v49 = vor.u32 %v1615_v41, %v1497_v42  ;;  %1057 = vmatpush.bf16.msra.mxu2 %v1428_v57 }
 0x26b   :  { %v610_v50 = vpop.f32.mrf.mxu0 }
 0x26c   :  { %v1614_v50 = vld [vmem:[#allocation17 + $0xb4] sm:$0xf0]  ;;  %1069 = vmatpush.bf16.msra.mxu3 %v1500_v49 }
 0x26d   :  { %v1488_v56 = vor.u32 %v1614_v50, %v1487_v48  ;;  %1032 = vmatpush.bf16.msra.mxu0 %v1416_v3  ;;  %v859_v50 = vld [vmem:[%s2101_s14] sm:$0x3]  ;;  %s1124_s14 = sshll.u32 %s1943_s12, 4  ;;  %s1125_s14 = int_to_ptr.vmem [resolvable:$true] %s1124_s14 }
 0x26e   :  { %1058 = vmatpush.bf16.msra.mxu2 %v1420_v5  ;;  %v863_v51 = vperm.slane %v859_v50, 0 }
 0x26f   :  { %1044 = vmatpush.bf16.msra.mxu1 %v1488_v56  ;;  %v864_v56 = vperm.slane %v859_v50, 1 }
 0x270   :  { %1070 = vmatpush.bf16.msra.mxu3 %v1492_v61 }
 0x271   :  { %1033 = vmatpush.bf16.msra.mxu0 %v1408_v16 }
 0x272   :  { %1059 = vmatpush.bf16.msra.mxu2 %v1412_v21 }
 0x273   :  { %1045 = vmatpush.bf16.msra.mxu1 %v1480_v4 }
 0x274   :  { %1071 = vmatpush.bf16.msra.mxu3 %v1484_v7 }
 0x275   :  { %1034 = vmatpush.bf16.msra.mxu0 %v1400_v28 }
 0x276   :  { %1060 = vmatpush.bf16.msra.mxu2 %v1404_v33 }
 0x277   :  { %1046 = vmatpush.bf16.msra.mxu1 %v1472_v20 }
 0x278   :  { %1072 = vmatpush.bf16.msra.mxu3 %v1476_v24 }
 0x27b   :  { %1047 = vmatpush.bf16.msra.mxu1 %v1464_v32 }
 0x27c   :  { %1073 = vmatpush.bf16.msra.mxu3 %v1468_v36 }
 0x2e7   :  { %v691_v8 = vpop.f32.mrf.mxu1 }
 0x2e8   :  { %v692_v9 = vadd.f32 %v1642_v6, %v691_v8 }
 0x2ea   :  { %v695_v10 = vmax.f32 %v692_v9, 0.0 }
 0x2ec   :  { %v713_v11 = vpack.c.bf16 %v695_v10, %v695_v10 }
 0x2ee   :  { %807 = vmatmul.bf16.vlgmr.msrb.gmra.mxu2 %v713_v11  ;;  %820 = vmatmul.bf16.vlgmr.msrb.gmra.mxu3 %v713_v11 }
 0x2ef   :  { %v693_v12 = vpop.f32.mrf.mxu1 }
 0x371   :  { %v808_v40 = vpop.f32.mrf.mxu2  ;;  %v821_v41 = vpop.f32.mrf.mxu3 }
 0x372   :  { %v809_v42 = vadd.f32 %v808_v40, %v715_v38  ;;  %v822_v43 = vadd.f32 %v821_v41, %v716_v39 }
 0x374   :  { %v825_v44 = vmax.f32 %v809_v42, 0.0  ;;  %v826_v45 = vmax.f32 %v822_v43, 0.0 }
 0x376   :  { %v860_v46 = vpack.c.bf16 %v825_v44, %v825_v44  ;;  %v861_v47 = vpack.c.bf16 %v826_v45, %v826_v45 }
 0x378   :  { %1035 = vmatmul.bf16.vlgmr.msra.gmra.mxu0 %v860_v46  ;;  %1048 = vmatmul.bf16.vlgmr.msra.gmra.mxu1 %v861_v47 }
 0x379   :  { %1061 = vmatmul.bf16.vlgmr.msra.gmra.mxu2 %v860_v46  ;;  %1074 = vmatmul.bf16.vlgmr.msra.gmra.mxu3 %v861_v47  ;;  %v810_v48 = vpop.f32.mrf.mxu2  ;;  %v823_v49 = vpop.f32.mrf.mxu3 }
 0x3f5   :  { %v1036_v52 = vpop.f32.mrf.mxu0  ;;  %v1049_v53 = vpop.f32.mrf.mxu1 }
 0x3f6   :  { %v1037_v54 = vadd.f32 %v1036_v52, %v863_v51 }
 0x3f8   :  { %v1050_v55 = vadd.f32 %v1049_v53, %v1037_v54 }
 0x3fa   :  { %v1525_v57 = vmul.f32 -1.442695, %v1050_v55 }
 0x3fc   :  { %1643 = vpow2.f32 %v1525_v57  ;;  %v1062_v58 = vpop.f32.mrf.mxu2  ;;  %v1075_v59 = vpop.f32.mrf.mxu3 }
 0x3fd   :  { %v1063_v60 = vadd.f32 %v1062_v58, %v864_v56  ;;  %v1038_v61 = vpop.f32.mrf.mxu0  ;;  %v1051_v62 = vpop.f32.mrf.mxu1 }
 0x3ff   :  { %v1076_v63 = vadd.f32 %v1075_v59, %v1063_v60 }
 0x401   :  { %v1526_v0 = vmul.f32 -1.442695, %v1076_v63 }
 0x402   :  { %v1644_v1 = vpop.eup %1643 }
 0x403   :  { %v1085_v2 = vadd.f32 1.0, %v1644_v1  ;;  %1645 = vpow2.f32 %v1526_v0 }
 0x404   :  { %v1064_v3 = vpop.f32.mrf.mxu2  ;;  %v1077_v4 = vpop.f32.mrf.mxu3 }
 0x405   :  { %1647 = vrcp.f32 %v1085_v2  ;;  %v1098_v10 = vand.u32 2147483648, %v1085_v2  ;;  %v1096_v12 = vand.u32 2147483647, %v1085_v2  ;;  %vm1092_vm1 = vweird.f32 %v1085_v2 }
 0x407   :  { %v1099_v16 = vor.u32 1.1754944e-38, %v1098_v10  ;;  %vm1097_vm3 = vcmp.eq.f32.partialorder %v1096_v12, 8.507059e+37 }
 0x409   :  { %v1646_v5 = vpop.eup %1645 }
 0x40a   :  { %v1086_v6 = vadd.f32 1.0, %v1646_v5 }
 0x40b   :  { %v1648_v7 = vpop.eup %1647 }
 0x40c   :  { %v1088_v8 = vmul.f32 %v1648_v7, %v1085_v2  ;;  %1649 = vrcp.f32 %v1086_v6  ;;  %vm1093_vm0 = vweird.f32 %v1648_v7  ;;  %v1113_v20 = vand.u32 2147483648, %v1086_v6 }
 0x40d   :  { %vm1094_vm2 = vmor %vm1092_vm1, %vm1093_vm0  ;;  %v1111_v22 = vand.u32 2147483647, %v1086_v6  ;;  %vm1107_vm5 = vweird.f32 %v1086_v6 }
 0x40e   :  { %v1089_v9 = vsub.f32 1.0, %v1088_v8  ;;  %v1114_v24 = vor.u32 1.1754944e-38, %v1113_v20 }
 0x40f   :  { %vm1112_vm7 = vcmp.eq.f32.partialorder %v1111_v22, 8.507059e+37 }
 0x410   :  { %v1090_v11 = vmul.f32 %v1648_v7, %v1089_v9 }
 0x412   :  { %v1650_v13 = vpop.eup %1649  ;;  %v1091_v14 = vadd.f32 %v1648_v7, %v1090_v11 }
 0x413   :  { %v1103_v15 = vmul.f32 %v1650_v13, %v1086_v6  ;;  %vm1108_vm4 = vweird.f32 %v1650_v13 }
 0x414   :  { %v1095_v17 = vsel %vm1094_vm2, %v1648_v7, %v1091_v14  ;;  %vm1109_vm6 = vmor %vm1107_vm5, %vm1108_vm4 }
 0x415   :  { %v1104_v18 = vsub.f32 1.0, %v1103_v15  ;;  %v1100_v19 = vsel %vm1097_vm3, %v1099_v16, %v1095_v17 }
 0x416   :  { %1117 = vst [vmem:[#allocation19] sm:$0xff] %v1100_v19 }
 0x417   :  { %v1105_v21 = vmul.f32 %v1650_v13, %v1104_v18 }
 0x419   :  { %v1106_v23 = vadd.f32 %v1650_v13, %v1105_v21 }
 0x41b   :  { %v1110_v25 = vsel %vm1109_vm6, %v1650_v13, %v1106_v23 }
 0x41c   :  { %v1115_v26 = vsel %vm1112_vm7, %v1114_v24, %v1110_v25 }
 0x41d   :  { %1118 = vst [vmem:[#allocation19 + $0x8] sm:$0xff] %v1115_v26 }
 0x41e   :  { %1129 = dma.vmem_to_hbm [thread:$0]  %s1125_s14, 256, %s1127_s20, [#allocation4]  }
 0x41f   :  { %1927 = dma.done.wait [#allocation4], 256  }
 0x420   :  { %1928 = vsyncadd [#allocation4], 4294967040 }
 0x421   :  { %1134 = vsyncpa [#allocation3], 1 }
 0x422   :  { %1135 = vsyncpa [#allocation6], 1 }
 0x423   :  { %1136 = vsyncpa [#allocation9], 1 }
 0x424   :  { %1137 = vsyncpa [#allocation12], 1 }
 0x425   :  { %1138 = vsyncpa [#allocation15], 1 }
 0x426   :  { %1139 = vsyncpa [#allocation18], 1 }
 0x427   :  { %1140 = vsyncpa [#allocation4], 1 }

</bundles_post_ra>
